<compile_context>
chip_gen: v6e
topology: v6e:2x2x1
jax: 0.10.0
libtpu: 0.0.40
codegen_flags: <defaults>
</compile_context>

<pallas_src>
import functools

import jax
import jax.numpy as jnp
from jax.experimental import pallas as pl
from jax.experimental.pallas import tpu as pltpu

IGNORE_INDEX = 255
ALPHA = 0.4


# ----------------------------------------------------------------------------
# Fused kernel: masked cross-entropy partial sums + per-image class histogram.
#
# Grid: (image, pixel-chunk, pixel-tile) with ("parallel","parallel","arbitrary").
# Blocks per step:
#   logits : (1, C, T)  -- classes on sublanes, pixels on lanes (lane-dense, no transpose)
#   target : (1, 1, T)  -- native integer dtype, widened in-register
# Scratch (persists across the inner "arbitrary" axis, re-initialized per (image,chunk)):
#   loss_acc (1, T) f32, cnt_acc (1, T) i32, hist_acc (C, 1) i32
# Outputs, one block per (image, chunk), written only at the last pixel tile:
#   sum (N, nc, 1, 1) f32, cnt (N, nc, 1, 1) i32, hist (N, nc, C, 1) i32
# ----------------------------------------------------------------------------
def _fused_ce_hist_kernel(x_ref, t_ref, sum_ref, cnt_ref, hist_ref,
                          loss_acc, cnt_acc, hist_acc,
                          *, ignore_index, hw, tiles_per_chunk):
    c_chunk = pl.program_id(1)
    j = pl.program_id(2)

    @pl.when(j == 0)
    def _():
        loss_acc[...] = jnp.zeros_like(loss_acc)
        cnt_acc[...] = jnp.zeros_like(cnt_acc)
        hist_acc[...] = jnp.zeros_like(hist_acc)

    x = x_ref[0]                                   # (C, T), native dtype
    if x.dtype != jnp.bfloat16:
        x = x.astype(jnp.float32)                  # f32 path for anything non-bf16
    nclass, thw = x.shape
    t = t_ref[0].astype(jnp.int32)                 # (1, T) widened in-register

    # Global pixel offset of this tile (UN-clamped, so a clamped duplicate block at the
    # chunk tail is fully masked out).  Padded / out-of-range lanes are forced to
    # ignore_index so they drop out of both the CE mask and the class one-hot
    # (requires ignore_index outside [0, C), asserted in the wrapper).
    tile_idx = c_chunk * tiles_per_chunk + j
    lane = jax.lax.broadcasted_iota(jnp.int32, (1, thw), 1)
    in_bounds = (tile_idx * thw + lane) < hw       # (1, T)
    t = jnp.where(in_bounds, t, ignore_index)
    valid = t != ignore_index                      # (1, T)

    # Numerically stable CE:  loss = log(sum_c exp(x_c - m)) - (x_t - m).
    # max / sub / select stay in the input dtype (bf16 on v6e/v7x halves VALU vregs);
    # exp / sum / log and the accumulation are f32.
    m = jnp.max(x, axis=0, keepdims=True)          # (1, T), exact in any dtype
    xm = x - m                                     # (C, T)
    e = jnp.exp(xm.astype(jnp.float32))            # f32 on the EUP
    lse = jnp.log(jnp.sum(e, axis=0, keepdims=True))                      # (1, T) f32

    # One-hot of the target class, computed ONCE and reused for the logit gather AND
    # the class histogram (garbage / ignore lanes match no class).
    class_iota = jax.lax.broadcasted_iota(jnp.int32, (nclass, thw), 0)
    onehot = class_iota == t                       # (C, T) bool
    tgt = jnp.sum(jnp.where(onehot, xm, 0), axis=0, keepdims=True).astype(jnp.float32)

    # Deferred per-lane accumulation for loss / count (no cross-lane reduce per step).
    loss_acc[...] += jnp.where(valid, lse - tgt, 0.0)
    cnt_acc[...] += valid.astype(jnp.int32)
    # Histogram: per-step lane reduce into a tiny (C, 1) accumulator (no big RMW scratch,
    # no extra full-size compare; exact i32 counts).
    hist_acc[...] += jnp.sum(onehot, axis=1, keepdims=True, dtype=jnp.int32)

    @pl.when(j == pl.num_programs(2) - 1)
    def _():
        sum_ref[...] = jnp.sum(loss_acc[...]).reshape(1, 1, 1, 1)
        cnt_ref[...] = jnp.sum(cnt_acc[...]).reshape(1, 1, 1, 1)
        hist_ref[...] = hist_acc[...].reshape(1, 1, nclass, 1)


# ----------------------------------------------------------------------------
# Tile sizing / VMEM budgeting (generation-aware).
# ----------------------------------------------------------------------------
def _vmem_budget_bytes():
    cap = 64 * 1024 * 1024                         # conservative fallback (fits v7x)
    try:
        info = pltpu.get_tpu_info()
        cap = int(getattr(info, "vmem_capacity_bytes", cap) or cap)
    except Exception:
        pass
    # ~25% headroom for Mosaic-internal scratch / constants:
    #   v7x  64 MiB -> ~48 MiB usable;  v5e/v6e 128 MiB -> ~96 MiB usable.
    return (cap * 3) // 4


def _choose_tile_hw(hw, num_classes, logit_bytes, target_bytes, budget):
    """Largest lane tile (multiple of 128, <=64K) whose FULL per-step working set fits
    the generation-aware VMEM budget."""
    # Per pixel of tile:
    #   2x double-buffered logits block           : 2 * C * logit_bytes
    #   2x double-buffered target block           : 2 * target_bytes
    #   loss_acc (f32) + cnt_acc (i32) scratch    : 8
    #   ~4 live (C, tile) f32-wide intermediates  : 4 * C * 4   (upcast/exp/select path)
    per_px = 2 * num_classes * logit_bytes + 2 * target_bytes + 8 + 4 * num_classes * 4
    t = budget // max(per_px, 1)
    t = min(t, 65536)                              # grid-step overhead <2% beyond this
    t = max(t, 512)
    t = (t // 128) * 128
    t = min(t, ((hw + 127) // 128) * 128)          # never tile past the pixel count
    return max(t, 128)


def fused_ce_and_histogram(logits, targets, num_classes, ignore_index=IGNORE_INDEX,
                           tile_hw=None):
    """logits: (N, C, HW) float (native dtype, bf16 ok), targets: (N, 1, HW) int (native).

    Returns per-(image, pixel-chunk) partials:
      loss_sum (N, nc, 1, 1) f32, valid_count (N, nc, 1, 1) i32, class_hist (N, nc, C, 1) i32.
    """
    N, C, HW = logits.shape
    if 0 <= ignore_index < num_classes:
        raise ValueError("ignore_index must lie outside [0, num_classes); otherwise the "
                         "ignore bucket aliases a class and the mode label is corrupted.")

    budget = _vmem_budget_bytes()
    if tile_hw is None:
        tile_hw = _choose_tile_hw(HW, C, logits.dtype.itemsize,
                                  targets.dtype.itemsize, budget)

    n_hw_total = pl.cdiv(HW, tile_hw)
    # Outer parallel pixel-chunk axis so v7x's second TensorCore has work when N is
    # 1 / odd (neutral on single-TC v5e/v6e).
    n_chunks = 2 if (N % 2 == 1 and n_hw_total >= 2) else 1
    tpc = pl.cdiv(n_hw_total, n_chunks)
    last_blk = n_hw_total - 1

    # Chunk-trailing steps that would index a fully out-of-range block are clamped to the
    # last real block; the kernel masks them out via the UN-clamped pixel offset.
    def in_map(i, c, j):
        return (i, 0, jnp.minimum(c * tpc + j, last_blk))

    kernel = functools.partial(_fused_ce_hist_kernel, ignore_index=ignore_index,
                               hw=HW, tiles_per_chunk=tpc)

    # TODO(synk): if profiling on v5e still shows exposed logits DMA after the byte
    # reductions, add pipeline_mode=pl.Buffered(3) to the logits BlockSpec.
    # TODO(synk): for C <= 8 the class axis underfills sublanes; folding pixel groups
    # into the sublane axis would roughly double VPU efficiency for tiny-C heads.
    sums, cnts, hists = pl.pallas_call(
        kernel,
        out_shape=(jax.ShapeDtypeStruct((N, n_chunks, 1, 1), jnp.float32),
                   jax.ShapeDtypeStruct((N, n_chunks, 1, 1), jnp.int32),
                   jax.ShapeDtypeStruct((N, n_chunks, C, 1), jnp.int32)),
        grid_spec=pltpu.PrefetchScalarGridSpec(
            num_scalar_prefetch=0,
            grid=(N, n_chunks, tpc),
            in_specs=[pl.BlockSpec((1, C, tile_hw), in_map),
                      pl.BlockSpec((1, 1, tile_hw), in_map)],
            out_specs=(pl.BlockSpec((1, 1, 1, 1), lambda i, c, j: (i, c, 0, 0)),
                       pl.BlockSpec((1, 1, 1, 1), lambda i, c, j: (i, c, 0, 0)),
                       pl.BlockSpec((1, 1, C, 1), lambda i, c, j: (i, c, 0, 0))),
            scratch_shapes=[pltpu.VMEM((1, tile_hw), jnp.float32),
                            pltpu.VMEM((1, tile_hw), jnp.int32),
                            pltpu.VMEM((C, 1), jnp.int32)]),
        compiler_params=pltpu.CompilerParams(
            dimension_semantics=("parallel", "parallel", "arbitrary"),
            vmem_limit_bytes=int(budget)),
    )(logits, targets)
    return sums, cnts, hists


# ----------------------------------------------------------------------------
# AuxCELoss forward (tuple path + plain-tensor path), matching the PyTorch module.
# ----------------------------------------------------------------------------
def _prep_target(target, N, HW):
    t = target.reshape(N, 1, HW)
    # Pass narrow integer targets in their native dtype (less HBM traffic, no astype
    # materialization); anything else (e.g. int64/bool) is converted once.
    if t.dtype not in (jnp.int32, jnp.int16, jnp.int8, jnp.uint8, jnp.uint16):
        t = t.astype(jnp.int32)
    return t


def aux_ce_loss(net_out, target, alpha=ALPHA, ignore_index=IGNORE_INDEX, tile_hw=None):
    if isinstance(net_out, (tuple, list)) and len(net_out) == 2:
        predicted_masks, predicted_labels = net_out
        N, C = predicted_masks.shape[0], predicted_masks.shape[1]
        HW = 1
        for d in predicted_masks.shape[2:]:
            HW *= d

        # Free reshapes only: no transpose, no dtype cast (kernel upcasts in-register).
        logits = predicted_masks.reshape(N, C, HW)
        tgt = _prep_target(target, N, HW)

        sums, cnts, hists = fused_ce_and_histogram(logits, tgt, C, ignore_index, tile_hw)

        valid_per_img = jnp.sum(cnts, axis=(1, 2, 3))                      # (N,)
        ce_main = jnp.sum(sums) / jnp.sum(valid_per_img).astype(jnp.float32)

        # labels = per-image mode of the flattened target (torch.mode tie-break =
        # smallest value, reproduced by argmax-first over ascending class buckets with
        # the ignore bucket last).  ignore bucket = HW - valid count (target read once).
        class_counts = jnp.sum(hists, axis=1).reshape(N, C)                # (N, C) i32
        ignore_counts = (HW - valid_per_img).astype(jnp.int32)             # (N,)
        counts = jnp.concatenate([class_counts, ignore_counts[:, None]], axis=1)
        idx = jnp.argmax(counts, axis=1)
        labels = jnp.where(idx == C, ignore_index, idx).astype(jnp.int32)

        # Aux CE over the tiny (N, C) label logits in plain jnp (a kernel launch there
        # is pure overhead).
        logp = jax.nn.log_softmax(predicted_labels.astype(jnp.float32), axis=-1)
        valid2 = labels != ignore_index
        safe = jnp.where(valid2, labels, 0)
        picked = jnp.take_along_axis(logp, safe[:, None], axis=1)[:, 0]
        ce_aux = -jnp.sum(jnp.where(valid2, picked, 0.0)) / jnp.sum(valid2)

        return ce_main + alpha * ce_aux

    # Plain-tensor path: CE(net_out, target), ignore_index masked, mean over valid.
    x = net_out
    N, C = x.shape[0], x.shape[1]
    HW = 1
    for d in x.shape[2:]:
        HW *= d
    logits = x.reshape(N, C, HW)
    tgt = _prep_target(target, N, HW)
    sums, cnts, _ = fused_ce_and_histogram(logits, tgt, C, ignore_index, tile_hw)
    return jnp.sum(sums) / jnp.sum(cnts).astype(jnp.float32)


# ----------------------------------------------------------------------------
# Pure-JAX references (correctness sanity checks).
# ----------------------------------------------------------------------------
def _ref_pixel_ce(masks, target, ignore=IGNORE_INDEX):
    logp = jax.nn.log_softmax(masks.astype(jnp.float32), axis=1)
    valid = target != ignore
    safe = jnp.where(valid, target, 0).astype(jnp.int32)
    g = jnp.take_along_axis(logp, safe[:, None], axis=1)[:, 0]
    return -jnp.sum(jnp.where(valid, g, 0.0)) / jnp.sum(valid)


def _ref_loss(masks, label_logits, target, alpha=ALPHA, ignore=IGNORE_INDEX):
    N, C = masks.shape[0], masks.shape[1]
    ce_main = _ref_pixel_ce(masks, target, ignore)

    tf = target.reshape(N, -1)
    bucket_vals = jnp.array(list(range(C)) + [ignore], dtype=jnp.int32)
    counts = jnp.sum(tf[:, :, None] == bucket_vals[None, None, :], axis=1)
    idx = jnp.argmax(counts, axis=1)
    labels = jnp.where(idx == C, ignore, idx).astype(jnp.int32)

    logp2 = jax.nn.log_softmax(label_logits.astype(jnp.float32), axis=1)
    valid2 = labels != ignore
    g2 = jnp.take_along_axis(logp2, jnp.where(valid2, labels, 0)[:, None], axis=1)[:, 0]
    ce_aux = -jnp.sum(jnp.where(valid2, g2, 0.0)) / jnp.sum(valid2)
    return ce_main + alpha * ce_aux


if __name__ == "__main__":
    key = jax.random.PRNGKey(0)
    k1, k2, k3, k4, k5, k6 = jax.random.split(key, 6)

    # --- primary test: tuple path, f32, batch=2 --------------------------------------
    N, C, H, W = 2, 4, 16, 16
    predicted_masks = jax.random.normal(k1, (N, C, H, W), dtype=jnp.float32)
    predicted_labels = jax.random.normal(k2, (N, C), dtype=jnp.float32)
    target = jax.random.randint(k3, (N, H, W), 0, C, dtype=jnp.int32)
    target = target.at[:, :2, :].set(IGNORE_INDEX)      # exercise the ignore mask

    loss = jax.block_until_ready(aux_ce_loss((predicted_masks, predicted_labels), target))
    ref = jax.block_until_ready(_ref_loss(predicted_masks, predicted_labels, target))
    assert jnp.allclose(loss, ref, rtol=1e-5, atol=1e-5), (loss, ref)

    # --- plain-tensor path ------------------------------------------------------------
    loss2 = jax.block_until_ready(aux_ce_loss(predicted_masks, target))
    ref2 = jax.block_until_ready(_ref_pixel_ce(predicted_masks, target))
    assert jnp.allclose(loss2, ref2, rtol=1e-5, atol=1e-5), (loss2, ref2)

    # --- N=1, odd tile count: exercises the parallel pixel-chunk axis, the partial last
    #     tile and the clamped fully-out-of-range trailing tile -------------------------
    N3, C3, H3, W3 = 1, 5, 18, 18
    m3 = jax.random.normal(k4, (N3, C3, H3, W3), dtype=jnp.float32)
    l3 = jax.random.normal(k5, (N3, C3), dtype=jnp.float32)
    t3 = jax.random.randint(k6, (N3, H3, W3), 0, C3, dtype=jnp.int32)
    t3 = t3.at[:, :1, :].set(IGNORE_INDEX)
    loss3 = jax.block_until_ready(aux_ce_loss((m3, l3), t3, tile_hw=128))
    ref3 = jax.block_until_ready(_ref_loss(m3, l3, t3))
    assert jnp.allclose(loss3, ref3, rtol=1e-5, atol=1e-5), (loss3, ref3)

    # --- bf16 logits: exercises the bf16 VALU path (reference upcasts before softmax,
    #     so only the in-kernel bf16 (x - m) rounding differs) --------------------------
    masks_bf16 = predicted_masks.astype(jnp.bfloat16)
    loss4 = jax.block_until_ready(aux_ce_loss((masks_bf16, predicted_labels), target))
    ref4 = jax.block_until_ready(_ref_loss(masks_bf16, predicted_labels, target))
    assert jnp.allclose(loss4, ref4, rtol=5e-2, atol=5e-2), (loss4, ref4)

    print("KERNEL_OK")
</pallas_src>

<mosaic_0001>
module attributes {stable_mosaic.version = 11 : i64} {
  func.func @_fused_ce_hist_kernel(%arg0: i32, %arg1: i32, %arg2: i32, %arg3: memref<1x4x256xf32, #tpu.memory_space<vmem>>, %arg4: memref<1x1x256xi32, #tpu.memory_space<vmem>>, %arg5: memref<1x1x1x1xf32, #tpu.memory_space<vmem>>, %arg6: memref<1x1x1x1xi32, #tpu.memory_space<vmem>>, %arg7: memref<1x1x4x1xi32, #tpu.memory_space<vmem>>, %arg8: memref<1x256xf32, #tpu.memory_space<vmem>>, %arg9: memref<1x256xi32, #tpu.memory_space<vmem>>, %arg10: memref<4x1xi32, #tpu.memory_space<vmem>>) attributes {dimension_semantics = [#tpu.dimension_semantics<parallel>, #tpu.dimension_semantics<parallel>, #tpu.dimension_semantics<arbitrary>], iteration_bounds = array<i64: 2, 1, 1>, scalar_prefetch = 0 : i64, scratch_operands = 3 : i64, tpu.core_type = #tpu.core_type<tc>, window_params = [{transform_indices = @transform_0, window_bounds = array<i64: 1, 4, 256>}, {transform_indices = @transform_1, window_bounds = array<i64: 1, 1, 256>}, {transform_indices = @transform_2, window_bounds = array<i64: 1, 1, 1, 1>}, {transform_indices = @transform_3, window_bounds = array<i64: 1, 1, 1, 1>}, {transform_indices = @transform_4, window_bounds = array<i64: 1, 1, 4, 1>}]} {
    %c0_i32 = arith.constant 0 : i32
    %0 = arith.cmpi eq, %arg2, %c0_i32 : i32
    %1 = arith.extui %0 : i1 to i32
    %c0_i32_0 = arith.constant 0 : i32
    %2 = arith.cmpi ne, %1, %c0_i32_0 : i32
    scf.if %2 {
      %cst_27 = arith.constant 0.000000e+00 : f32
      %54 = vector.broadcast %cst_27 : f32 to vector<1x256xf32>
      %c0_28 = arith.constant 0 : index
      %c0_29 = arith.constant 0 : index
      %55 = vector.load %arg8[%c0_28, %c0_29] : memref<1x256xf32, #tpu.memory_space<vmem>>, vector<1x256xf32>
      tpu.vector_store %arg8[%c0_28, %c0_29], %54 {strides = array<i32>} : memref<1x256xf32, #tpu.memory_space<vmem>>, vector<1x256xf32>,
      %c0_i32_30 = arith.constant 0 : i32
      %56 = vector.broadcast %c0_i32_30 : i32 to vector<1x256xi32>
      %c0_31 = arith.constant 0 : index
      %c0_32 = arith.constant 0 : index
      %57 = vector.load %arg9[%c0_31, %c0_32] : memref<1x256xi32, #tpu.memory_space<vmem>>, vector<1x256xi32>
      tpu.vector_store %arg9[%c0_31, %c0_32], %56 {strides = array<i32>} : memref<1x256xi32, #tpu.memory_space<vmem>>, vector<1x256xi32>,
      %c0_i32_33 = arith.constant 0 : i32
      %58 = vector.broadcast %c0_i32_33 : i32 to vector<4x1xi32>
      %c0_34 = arith.constant 0 : index
      %c0_35 = arith.constant 0 : index
      %59 = vector.load %arg10[%c0_34, %c0_35] : memref<4x1xi32, #tpu.memory_space<vmem>>, vector<4x1xi32>
      tpu.vector_store %arg10[%c0_34, %c0_35], %58 {strides = array<i32>} : memref<4x1xi32, #tpu.memory_space<vmem>>, vector<4x1xi32>,
    } else {
    }
    %c0 = arith.constant 0 : index
    %c0_1 = arith.constant 0 : index
    %c0_2 = arith.constant 0 : index
    %3 = vector.load %arg3[%c0, %c0_1, %c0_2] : memref<1x4x256xf32, #tpu.memory_space<vmem>>, vector<1x4x256xf32>
    %4 = vector.shape_cast %3 : vector<1x4x256xf32> to vector<4x256xf32>
    %c0_3 = arith.constant 0 : index
    %c0_4 = arith.constant 0 : index
    %c0_5 = arith.constant 0 : index
    %5 = vector.load %arg4[%c0_3, %c0_4, %c0_5] : memref<1x1x256xi32, #tpu.memory_space<vmem>>, vector<1x1x256xi32>
    %6 = vector.shape_cast %5 : vector<1x1x256xi32> to vector<1x256xi32>
    %c1_i32 = arith.constant 1 : i32
    %7 = arith.muli %arg1, %c1_i32 : i32
    %8 = arith.addi %7, %arg2 : i32
    %9 = tpu.iota {dimensions = array<i32: 1>} : vector<1x256xi32>
    %c256_i32 = arith.constant 256 : i32
    %10 = arith.muli %8, %c256_i32 : i32
    %11 = vector.broadcast %10 : i32 to vector<1x256xi32>
    %12 = arith.addi %11, %9 : vector<1x256xi32>
    %c256_i32_6 = arith.constant 256 : i32
    %13 = vector.broadcast %c256_i32_6 : i32 to vector<1x256xi32>
    %14 = arith.cmpi slt, %12, %13 : vector<1x256xi32>
    %c255_i32 = arith.constant 255 : i32
    %15 = vector.broadcast %c255_i32 : i32 to vector<1x256xi32>
    %16 = arith.select %14, %6, %15 : vector<1x256xi1>, vector<1x256xi32>
    %c255_i32_7 = arith.constant 255 : i32
    %17 = vector.broadcast %c255_i32_7 : i32 to vector<1x256xi32>
    %18 = arith.cmpi ne, %16, %17 : vector<1x256xi32>
    %cst = arith.constant dense<0xFF800000> : vector<256xf32>
    %19 = vector.multi_reduction <maximumf>, %4, %cst [0] : vector<4x256xf32> to vector<256xf32>
    %20 = vector.shape_cast %19 : vector<256xf32> to vector<1x256xf32>
    %21 = vector.broadcast %20 : vector<1x256xf32> to vector<4x256xf32>
    %22 = arith.subf %4, %21 : vector<4x256xf32>
    %23 = math.exp %22 : vector<4x256xf32>
    %cst_8 = arith.constant dense<0.000000e+00> : vector<256xf32>
    %24 = vector.multi_reduction <add>, %23, %cst_8 [0] : vector<4x256xf32> to vector<256xf32>
    %25 = vector.shape_cast %24 : vector<256xf32> to vector<1x256xf32>
    %26 = math.log %25 : vector<1x256xf32>
    %27 = tpu.iota {dimensions = array<i32: 0>} : vector<4x256xi32>
    %28 = vector.broadcast %16 : vector<1x256xi32> to vector<4x256xi32>
    %29 = arith.cmpi eq, %27, %28 : vector<4x256xi32>
    %c0_i32_9 = arith.constant 0 : i32
    %30 = arith.sitofp %c0_i32_9 : i32 to f32
    %31 = vector.broadcast %30 : f32 to vector<4x256xf32>
    %32 = arith.select %29, %22, %31 : vector<4x256xi1>, vector<4x256xf32>
    %cst_10 = arith.constant dense<0.000000e+00> : vector<256xf32>
    %33 = vector.multi_reduction <add>, %32, %cst_10 [0] : vector<4x256xf32> to vector<256xf32>
    %34 = vector.shape_cast %33 : vector<256xf32> to vector<1x256xf32>
    %c0_11 = arith.constant 0 : index
    %c0_12 = arith.constant 0 : index
    %35 = vector.load %arg8[%c0_11, %c0_12] : memref<1x256xf32, #tpu.memory_space<vmem>>, vector<1x256xf32>
    %36 = arith.subf %26, %34 : vector<1x256xf32>
    %cst_13 = arith.constant 0.000000e+00 : f32
    %37 = vector.broadcast %cst_13 : f32 to vector<1x256xf32>
    %38 = arith.select %18, %36, %37 : vector<1x256xi1>, vector<1x256xf32>
    %39 = arith.addf %35, %38 : vector<1x256xf32>
    %c0_14 = arith.constant 0 : index
    %c0_15 = arith.constant 0 : index
    %40 = vector.load %arg8[%c0_14, %c0_15] : memref<1x256xf32, #tpu.memory_space<vmem>>, vector<1x256xf32>
    tpu.vector_store %arg8[%c0_14, %c0_15], %39 {strides = array<i32>} : memref<1x256xf32, #tpu.memory_space<vmem>>, vector<1x256xf32>,
    %c0_16 = arith.constant 0 : index
    %c0_17 = arith.constant 0 : index
    %41 = vector.load %arg9[%c0_16, %c0_17] : memref<1x256xi32, #tpu.memory_space<vmem>>, vector<1x256xi32>
    %42 = arith.extui %18 : vector<1x256xi1> to vector<1x256xi32>
    %43 = arith.addi %41, %42 : vector<1x256xi32>
    %c0_18 = arith.constant 0 : index
    %c0_19 = arith.constant 0 : index
    %44 = vector.load %arg9[%c0_18, %c0_19] : memref<1x256xi32, #tpu.memory_space<vmem>>, vector<1x256xi32>
    tpu.vector_store %arg9[%c0_18, %c0_19], %43 {strides = array<i32>} : memref<1x256xi32, #tpu.memory_space<vmem>>, vector<1x256xi32>,
    %c0_20 = arith.constant 0 : index
    %c0_21 = arith.constant 0 : index
    %45 = vector.load %arg10[%c0_20, %c0_21] : memref<4x1xi32, #tpu.memory_space<vmem>>, vector<4x1xi32>
    %46 = arith.extui %29 : vector<4x256xi1> to vector<4x256xi32>
    %cst_22 = arith.constant dense<0> : vector<4xi32>
    %47 = vector.multi_reduction <add>, %46, %cst_22 [1] : vector<4x256xi32> to vector<4xi32>
    %48 = vector.shape_cast %47 : vector<4xi32> to vector<4x1xi32>
    %49 = arith.addi %45, %48 : vector<4x1xi32>
    %c0_23 = arith.constant 0 : index
    %c0_24 = arith.constant 0 : index
    %50 = vector.load %arg10[%c0_23, %c0_24] : memref<4x1xi32, #tpu.memory_space<vmem>>, vector<4x1xi32>
    tpu.vector_store %arg10[%c0_23, %c0_24], %49 {strides = array<i32>} : memref<4x1xi32, #tpu.memory_space<vmem>>, vector<4x1xi32>,
    %c0_i32_25 = arith.constant 0 : i32
    %51 = arith.cmpi eq, %arg2, %c0_i32_25 : i32
    %52 = arith.extui %51 : i1 to i32
    %c0_i32_26 = arith.constant 0 : i32
    %53 = arith.cmpi ne, %52, %c0_i32_26 : i32
    scf.if %53 {
      %c0_27 = arith.constant 0 : index
      %c0_28 = arith.constant 0 : index
      %54 = vector.load %arg8[%c0_27, %c0_28] : memref<1x256xf32, #tpu.memory_space<vmem>>, vector<1x256xf32>
      %55 = vector.shape_cast %54 : vector<1x256xf32> to vector<1x1x256xf32>
      %cst_29 = arith.constant dense<0.000000e+00> : vector<1xf32>
      %56 = vector.multi_reduction <add>, %55, %cst_29 [1, 2] : vector<1x1x256xf32> to vector<1xf32>
      %57 = vector.shape_cast %56 : vector<1xf32> to vector<1x1x1xf32>
      %58 = vector.extract %57[0, 0, 0] : f32 from vector<1x1x1xf32>
      %59 = vector.broadcast %58 : f32 to vector<1x1x1x1xf32>
      %c0_30 = arith.constant 0 : index
      %c0_31 = arith.constant 0 : index
      %c0_32 = arith.constant 0 : index
      %c0_33 = arith.constant 0 : index
      %60 = vector.load %arg5[%c0_30, %c0_31, %c0_32, %c0_33] : memref<1x1x1x1xf32, #tpu.memory_space<vmem>>, vector<1x1x1x1xf32>
      tpu.vector_store %arg5[%c0_30, %c0_31, %c0_32, %c0_33], %59 {strides = array<i32>} : memref<1x1x1x1xf32, #tpu.memory_space<vmem>>, vector<1x1x1x1xf32>,
      %c0_34 = arith.constant 0 : index
      %c0_35 = arith.constant 0 : index
      %61 = vector.load %arg9[%c0_34, %c0_35] : memref<1x256xi32, #tpu.memory_space<vmem>>, vector<1x256xi32>
      %62 = vector.shape_cast %61 : vector<1x256xi32> to vector<1x1x256xi32>
      %cst_36 = arith.constant dense<0> : vector<1xi32>
      %63 = vector.multi_reduction <add>, %62, %cst_36 [1, 2] : vector<1x1x256xi32> to vector<1xi32>
      %64 = vector.shape_cast %63 : vector<1xi32> to vector<1x1x1xi32>
      %65 = vector.extract %64[0, 0, 0] : i32 from vector<1x1x1xi32>
      %66 = vector.broadcast %65 : i32 to vector<1x1x1x1xi32>
      %c0_37 = arith.constant 0 : index
      %c0_38 = arith.constant 0 : index
      %c0_39 = arith.constant 0 : index
      %c0_40 = arith.constant 0 : index
      %67 = vector.load %arg6[%c0_37, %c0_38, %c0_39, %c0_40] : memref<1x1x1x1xi32, #tpu.memory_space<vmem>>, vector<1x1x1x1xi32>
      tpu.vector_store %arg6[%c0_37, %c0_38, %c0_39, %c0_40], %66 {strides = array<i32>} : memref<1x1x1x1xi32, #tpu.memory_space<vmem>>, vector<1x1x1x1xi32>,
      %c0_41 = arith.constant 0 : index
      %c0_42 = arith.constant 0 : index
      %68 = vector.load %arg10[%c0_41, %c0_42] : memref<4x1xi32, #tpu.memory_space<vmem>>, vector<4x1xi32>
      %69 = vector.shape_cast %68 : vector<4x1xi32> to vector<1x1x4x1xi32>
      %c0_43 = arith.constant 0 : index
      %c0_44 = arith.constant 0 : index
      %c0_45 = arith.constant 0 : index
      %c0_46 = arith.constant 0 : index
      %70 = vector.load %arg7[%c0_43, %c0_44, %c0_45, %c0_46] : memref<1x1x4x1xi32, #tpu.memory_space<vmem>>, vector<1x1x4x1xi32>
      tpu.vector_store %arg7[%c0_43, %c0_44, %c0_45, %c0_46], %69 {strides = array<i32>} : memref<1x1x4x1xi32, #tpu.memory_space<vmem>>, vector<1x1x4x1xi32>,
    } else {
    }
    return
  }
  func.func @transform_0(%arg0: i32, %arg1: i32, %arg2: i32) -> (i32, i32, i32) {
    %c1_i32 = arith.constant 1 : i32
    %0 = arith.muli %arg1, %c1_i32 : i32
    %1 = arith.addi %0, %arg2 : i32
    %c0_i32 = arith.constant 0 : i32
    %2 = arith.minsi %1, %c0_i32 : i32
    %c0_i32_0 = arith.constant 0 : i32
    %c0_i32_1 = arith.constant 0 : i32
    return %arg0, %c0_i32_0, %2 : i32, i32, i32
  }
  func.func @transform_1(%arg0: i32, %arg1: i32, %arg2: i32) -> (i32, i32, i32) {
    %c1_i32 = arith.constant 1 : i32
    %0 = arith.muli %arg1, %c1_i32 : i32
    %1 = arith.addi %0, %arg2 : i32
    %c0_i32 = arith.constant 0 : i32
    %2 = arith.minsi %1, %c0_i32 : i32
    %c0_i32_0 = arith.constant 0 : i32
    %c0_i32_1 = arith.constant 0 : i32
    return %arg0, %c0_i32_0, %2 : i32, i32, i32
  }
  func.func @transform_2(%arg0: i32, %arg1: i32, %arg2: i32) -> (i32, i32, i32, i32) {
    %c0_i32 = arith.constant 0 : i32
    %c0_i32_0 = arith.constant 0 : i32
    %c0_i32_1 = arith.constant 0 : i32
    return %arg0, %arg1, %c0_i32, %c0_i32_0 : i32, i32, i32, i32
  }
  func.func @transform_3(%arg0: i32, %arg1: i32, %arg2: i32) -> (i32, i32, i32, i32) {
    %c0_i32 = arith.constant 0 : i32
    %c0_i32_0 = arith.constant 0 : i32
    %c0_i32_1 = arith.constant 0 : i32
    return %arg0, %arg1, %c0_i32, %c0_i32_0 : i32, i32, i32, i32
  }
  func.func @transform_4(%arg0: i32, %arg1: i32, %arg2: i32) -> (i32, i32, i32, i32) {
    %c0_i32 = arith.constant 0 : i32
    %c0_i32_0 = arith.constant 0 : i32
    %c0_i32_1 = arith.constant 0 : i32
    return %arg0, %arg1, %c0_i32, %c0_i32_0 : i32, i32, i32, i32
  }
}

</mosaic_0001>

<bundles_post_ra>
// kernel: tpu_custom_call.1
= control target key start
LH: loop header
LB: loop body
LE: loop exit
PB: predicated region body
PF: predicated region fallthrough
CT: control target
= control target key end

     0   :  { %10 = vsyncpa [#allocation6], 0  ;;  %s1235_s0 = inlined_call_operand.hbm [shape: f32[2,4,256], index: 0, kind: input, shape index: {}]   ;;  %s1236_s1 = inlined_call_operand.hbm [shape: s32[2,1,256], index: 1, kind: input, shape index: {}]   ;;  %s1237_s2 = inlined_call_operand.vmem [shape: f32[2,1,1,1], index: 2, kind: output, shape index: {0}]   ;;  %s1238_s3 = inlined_call_operand.vmem [shape: s32[2,1,1,1], index: 3, kind: output, shape index: {1}]   ;;  %s1239_s4 = inlined_call_operand.vmem [shape: s32[2,1,4,1], index: 4, kind: output, shape index: {2}]  }
   0x1   :  { %12 = vsyncpa [#allocation6 + $0x1], 0 }
   0x2   :  { %13 = vsyncpa [#allocation8], 0 }
   0x3   :  { %15 = vsyncpa [#allocation8 + $0x1], 0  ;;  %s1014_s15 = smov 0   ;;  %s1016_s16 = smov 0  }
   0x4   :  { %s1018_s17 = smov 0   ;;  %s1020_s18 = smov 0  }
   0x5   :  { %s1022_s19 = smov 0   ;;  %s1024_s20 = smov 0  }
   0x6 LB: > { %s780_s21 = sadd.s32 4294967295, %s982_s20   ;;  %s40_s22 = sadd.s32 1, %s978_s19  ;;  %s982_s20 = sphi %s1024_s20, %s21_s20   ;;  %s978_s19 = sphi %s1022_s19, %s1254_s19   ;;  %s974_s18 = sphi %s1020_s18, %s1253_s18   ;;  %s970_s17 = sphi %s1018_s17, %s1252_s17   ;;  %s966_s16 = sphi %s1016_s16, %s1251_s16   ;;  %s962_s15 = sphi %s1014_s15, %s1250_s15  }
   0x7   : > { %p42_p0 = scmp.ge.s32.totalorder %s40_s22, 2  ;;  %s55_s23 = sadd.s32 1, %s970_s17 }
   0x8   : > { %p62_p1 = scmp.ne.s32.totalorder %s970_s17, %s966_s16  ;;  %p63_p2 = scmp.eq.s32.totalorder %s982_s20, 0 }
   0x9   : > { %s1256_s22 = smov (%p42_p0, %s40_s22), 0  ;;  %p68_p4 = scmp.ne.s32.totalorder %s966_s16, %s962_s15 }
   0xa   : > { %p1050_p3 = por %p63_p2, %p62_p1  ;;  %s50_s25 = ssub.s32 %s978_s19, %s1256_s22 }
   0xb   : > { %p69_p5 = scmp.eq.s32.totalorder %s780_s21, 0  ;;  %p53_p6 = scmp.eq.s32.totalorder %s50_s25, 0 }
   0xc   : > { %p813_p8 = scmp.lt.s32.totalorder %s982_s20, 2  ;;  %s1066_s28 = sand.u32 1, %s970_s17  }
   0xd   : > { %p1057_p7 = por %p69_p5, %p68_p4  ;;  %s796_s29 = sshll.u32 %s978_s19, 7 }
   0xe   : > { %s1063_s27 = scalar_select %p53_p6, %s970_s17, %s55_s23  }
   0xf   : > { %s784_s30 = sshll.u32 %s1066_s28, 3  ;;  %s225_s7 = scalar_lea.hbm %s1235_s0, %s796_s29 }
  0x10   : > { %s214_s8 = scalar_lea.vmem [#allocation5], %s784_s30  ;;  %p1075_p9 = pnand %p813_p8, %p1050_p3 }
  0x11   : > { %s227_s9 = sshll.u32 %s214_s8, 4  ;;  %p790_p10 = scmp.ge.s32.totalorder %s982_s20, 1  ;;  %s228_s9 = int_to_ptr.vmem [resolvable:$true] %s227_s9 }
  0x12   : > { %p256_p11 = scmp.lt.s32.totalorder %s982_s20, 3  ;;  %s211_s11 = scalar_lea.sflag [#allocation6], %s1066_s28 }
  0x13   : > { %p874_p12 = pneg %p1075_p9  ;;  %s885_s12 = scalar_lea.vmem %s228_s9, 128 }
  0x14   : > { %p886_p13 = scmp.ne.s32.totalorder %s228_s9, %s885_s12  ;;  %s984_s13 = smov [#allocation5]  }
  0x15   : > { %s890_s14 = sshll.u32 %s984_s13, 4  ;;  %s891_s14 = int_to_ptr.vmem [resolvable:$false] %s890_s14 }
  0x16   : > { %p888_p0 = pnand %p886_p13, %p874_p12  ;;  %s892_s15 = scalar_lea.vmem %s891_s14, 256 }
  0x17   : > { %p893_p2 = scmp.lt.s32.totalorder %s228_s9, %s891_s14  ;;  %p894_p3 = scmp.lt.s32.totalorder %s892_s15, %s885_s12 }
  0x18   : > { %p889_p1 = pneg %p888_p0 }
  0x19   : > { %p895_p4 = por %p894_p3, %p893_p2 }
  0x1b   : > { %p896_p5 = pnand %p895_p4, %p889_p1 }
  0x1d   : > { %899 = shalt.err (!%p896_p5)
}
  0x1e   : > { %809 = dma.hbm_to_vmem [thread:$0]  (!%p1075_p9), %s225_s7, 128, %s228_s9, %s211_s11  }
  0x1f   : > { %p1093_p6 = pnand %p790_p10, %p256_p11  ;;  %s787_s23 = sshll.u32 %s1066_s28, 1 }
  0x20   : > { %s797_s24 = sshll.u32 %s978_s19, 5  ;;  %s238_s5 = scalar_lea.vmem [#allocation7], %s787_s23 }
  0x21   : > { %s249_s30 = scalar_lea.hbm %s1236_s1, %s797_s24  ;;  %s251_s6 = sshll.u32 %s238_s5, 4  ;;  %s252_s6 = int_to_ptr.vmem [resolvable:$true] %s251_s6 }
  0x22   : > { %s235_s8 = scalar_lea.sflag [#allocation8], %s1066_s28  ;;  %s913_s12 = scalar_lea.vmem %s252_s6, 32 }
  0x23   : > { %p914_p8 = scmp.ne.s32.totalorder %s252_s6, %s913_s12  ;;  %s985_s7 = smov [#allocation7]  }
  0x24   : > { %s918_s9 = sshll.u32 %s985_s7, 4  ;;  %s919_s9 = int_to_ptr.vmem [resolvable:$false] %s918_s9 }
  0x25   : > { %p916_p13 = pnand %p914_p8, %p874_p12  ;;  %s920_s11 = scalar_lea.vmem %s919_s9, 64 }
  0x26   : > { %p921_p10 = scmp.lt.s32.totalorder %s252_s6, %s919_s9  ;;  %p922_p11 = scmp.lt.s32.totalorder %s920_s11, %s913_s12 }
  0x27   : > { %p917_p0 = pneg %p916_p13 }
  0x28   : > { %p923_p1 = por %p922_p11, %p921_p10 }
  0x2a   : > { %p924_p2 = pnand %p923_p1, %p917_p0 }
  0x2c   : > { %927 = shalt.err (!%p924_p2)
}
  0x2d   : > { %812 = dma.hbm_to_vmem [thread:$0]  (!%p1075_p9), %s249_s30, 32, %s252_s6, %s235_s8  }
  0x2e   : > { %260 = sbr.rel (%p1093_p6) target bundleno = 350 (0x15e), region = 28  ;;  %s262_s28 = sand.u32 (!%p1093_p6), 1, %s966_s16  }
  0x2f   : > { %s791_s13 = sshll.u32 (!%p1093_p6), %s262_s28, 3  ;;  %s263_s14 = scalar_lea.sflag (!%p1093_p6), [#allocation6], %s262_s28 }
  0x30   : > { %s266_s15 = scalar_lea.vmem (!%p1093_p6), [#allocation5], %s791_s13 }
  0x33   : > { %953 = dma.done.wait (%p1057_p7), %s263_s14, 128  }
  0x34   : > { %955 = vsyncadd (%p1057_p7), %s263_s14, 4294967168  ;;  %s792_s23 = sshll.u32 %s262_s28, 1  ;;  %s272_s24 = scalar_lea.sflag [#allocation8], %s262_s28 }
  0x35   : > { %s275_s25 = scalar_lea.vmem [#allocation7], %s792_s23 }
  0x36   : > { %957 = dma.done.wait (%p1057_p7), %s272_s24, 32  }
  0x37   : > { %959 = vsyncadd (%p1057_p7), %s272_s24, 4294967264  ;;  %v350_v0 = vlaneseq  ;;  %v986_v3 = vmov 0   ;;  %v987_v4 = vmov 1966171168   ;;  %v988_v6 = vmov 0.0   ;;  %v358_v9 = vld [vmem:[%s266_s15] sm:$0xff] }
  0x38   : > { %v468_v5 = vunpack.c.l.s4 %v987_v4  ;;  %vm385_vm1 = vcmask 1043456   ;;  %v359_v10 = vld [vmem:[%s275_s25] sm:$0x3]  ;;  %v383_v14 = vcombine.high %v358_v9, %v358_v9  ;;  %vm544_vm4 = vcmask 1040384   ;;  %p327_p7 = scmp.lt.s32.totalorder %s974_s18, 1 }
  0x39   : > { %vm1119_vm0 = vcmp.lt.s32.totalorder %v350_v0, 256  ;;  %v371_v2 = vshrl.u32 %v350_v0, 7  ;;  %v386_v15 = vsel %vm385_vm1, %v358_v9, -inf  ;;  %vm356_vm7 = vcmask 3072  }
  0x3a   : > { %355 = vst.msk [vmem:[#allocation3] sm:$0x3] %vm1119_vm0, %v986_v3  ;;  %354 = vst.msk [vmem:[#allocation2] sm:$0x3] %vm1119_vm0, %v988_v6  ;;  %v469_v11 = vunpack.c.0.s8 %v468_v5  ;;  %v387_v16 = vrot.slane %v386_v15, 4  ;;  %v393_v17 = vsel %vm385_vm1, %v383_v14, -inf }
  0x3b   : > { %v1128_v7 = vsub.s32 0, %v371_v2  ;;  %v1130_v8 = vsub.s32 1, %v371_v2  ;;  %v394_v19 = vrot.slane %v393_v17, 4  ;;  %357 = vst.msk [vmem:[#allocation4] sm:$0xf] %vm356_vm7, %v986_v3  ;;  %s1258_s18 = smov (!%p327_p7, %s974_s18), 1 }
  0x3c   : > { %v388_v18 = vmax.f32 %v386_v15, %v387_v16  ;;  %v1142_v20 = vsub.s32 %v469_v11, %v371_v2  ;;  %s793_s26 = sshll.u32 %s1258_s18, 2  ;;  %s332_s6 = scalar_lea.vmem %s1237_s2, %s1258_s18  ;;  %vm558_vm8 = vcmask 0  }
  0x3d   : > { %v1133_v12 = vrot.slane %v359_v10, %v1128_v7  ;;  %v1136_v13 = vrot.slane %v359_v10, %v1130_v8  ;;  %v395_v24 = vmax.f32 %v393_v17, %v394_v19  ;;  %s345_s29 = scalar_lea.vmem %s1239_s4, %s793_s26  ;;  %s338_s9 = scalar_lea.vmem %s1238_s3, %s1258_s18 }
  0x3e   : > { %v389_v23 = vrot.slane %v388_v18, 2 }
  0x3f   : > { %vm380_vm2 = vcmp.ne.s32.totalorder %v1133_v12, 255  ;;  %vm381_vm3 = vcmp.ne.s32.totalorder %v1136_v13, 255  ;;  %v396_v27 = vrot.slane %v395_v24, 2  ;;  %v433_v39 = vrot.slane %v1133_v12, %v1128_v7 }
  0x40   : > { %v489_v21 = vsel %vm380_vm2, 1, %v986_v3  ;;  %v490_v22 = vsel %vm381_vm3, 1, %v986_v3  ;;  %v390_v26 = vmax.f32 %v388_v18, %v389_v23  ;;  %v437_v40 = vrot.slane %v1136_v13, %v1128_v7 }
  0x41   : > { %v491_v25 = vcombine.low %v489_v21, %v490_v22  ;;  %v488_v29 = vld [vmem:[#allocation3] sm:$0x3]  ;;  %v397_v31 = vmax.f32 %v395_v24, %v396_v27  ;;  %vm1159_vm5 = vcmp.eq.s32.totalorder %v371_v2, %v433_v39 }
  0x42   : > { %v391_v30 = vrot.slane %v390_v26, 1  ;;  %vm1163_vm6 = vcmp.eq.s32.totalorder %v371_v2, %v437_v40  ;;  %v509_v48 = vsel %vm1159_vm5, 1, %v986_v3 }
  0x43   : > { %v498_v28 = vrot.slane %v491_v25, %v1142_v20  ;;  %v398_v34 = vrot.slane %v397_v31, 1  ;;  %v510_v49 = vsel %vm1163_vm6, 1, %v986_v3  ;;  %v511_v52 = vsel %vm385_vm1, %v509_v48, 0 }
  0x44   : > { %v392_v33 = vmax.f32 %v390_v26, %v391_v30  ;;  %v512_v53 = vsel %vm385_vm1, %v510_v49, 0 }
  0x45   : > { %v505_v32 = vrot.slane %v498_v28, %v1142_v20  ;;  %v399_v36 = vmax.f32 %v397_v31, %v398_v34  ;;  %v1178_v57 = vadd.s32 %v512_v53, %v511_v52 }
  0x47   : > { %v506_v35 = vadd.s32 %v505_v32, %v488_v29  ;;  %v402_v37 = vcombine.low %v392_v33, %v399_v36  ;;  %v514_v59 = vand.u32 65535, %v1178_v57  ;;  %v515_v12 = vshrl.u32 %v1178_v57, 16 }
  0x49   : > { %507 = vst.msk [vmem:[#allocation3] sm:$0x3] %vm1119_vm0, %v506_v35  ;;  %v404_v38 = vsub.f32 %v358_v9, %v402_v37  ;;  %v516_v2 = vcvt.s32.f32 %v514_v59 }
  0x4b   : > { %v405_v41 = vmul.f32 1.442695, %v404_v38  ;;  %v441_v60 = vcombine.high %v404_v38, %v404_v38  ;;  %v443_v62 = vsel %vm1159_vm5, %v404_v38, 0.0 }
  0x4c   : > { %v445_v9 = vsel %vm385_vm1, %v443_v62, 0.0 }
  0x4d   : > { %866 = vpow2.f32 %v405_v41  ;;  %v444_v5 = vsel %vm1163_vm6, %v441_v60, 0.0  ;;  %v446_v17 = vrot.slane %v445_v9, 4 }
  0x4e   : > { %v452_v14 = vsel %vm385_vm1, %v444_v5, 0.0 }
  0x4f   : > { %v453_v21 = vrot.slane %v452_v14, 4  ;;  %v447_v24 = vadd.f32 %v446_v17, %v445_v9 }
  0x50   : > { %v560_v42 = vld [vmem:[#allocation3] sm:$0x3] }
  0x51   : > { %v564_v43 = vrot.slane %v560_v42, %v1128_v7  ;;  %v568_v46 = vrot.slane %v560_v42, %v1130_v8  ;;  %v454_v27 = vadd.f32 %v453_v21, %v452_v14  ;;  %v448_v29 = vrot.slane %v447_v24, 2  ;;  %v508_v14 = vld [vmem:[#allocation4] sm:$0xf] }
  0x53   : > { %v569_v47 = vsel %vm544_vm4, %v564_v43, 0  ;;  %v570_v50 = vsel %vm544_vm4, %v568_v46, 0  ;;  %v455_v30 = vrot.slane %v454_v27, 2  ;;  %v449_v31 = vadd.f32 %v448_v29, %v447_v24 }
  0x54   : > { %v571_v51 = vadd.s32 %v570_v50, %v569_v47  ;;  %v459_v47 = vld [vmem:[#allocation2] sm:$0x3] }
  0x55   : > { %v456_v32 = vadd.f32 %v455_v30, %v454_v27  ;;  %v450_v33 = vrot.slane %v449_v31, 1 }
  0x56   : > { %v573_v54 = vshrl.u32 %v571_v51, 16  ;;  %v572_v55 = vand.u32 65535, %v571_v51 }
  0x57   : > { %v457_v34 = vrot.slane %v456_v32, 1  ;;  %v451_v35 = vadd.f32 %v450_v33, %v449_v31 }
  0x58   : > { %v575_v56 = vcvt.s32.f32 %v573_v54  ;;  %v574_v58 = vcvt.s32.f32 %v572_v55  ;;  %v517_v55 = vcvt.s32.f32 %v515_v12 }
  0x59   : > { %v458_v38 = vadd.f32 %v457_v34, %v456_v32 }
  0x5a   : > { %578 = vadd.xlane.f32.xlu0 %v575_v56  ;;  %v867_v61 = vpop.eup %866 }
  0x5b   : > { %v408_v63 = vcombine.high %v867_v61, %v867_v61  ;;  %v410_v0 = vsel %vm385_vm1, %v867_v61, 0.0 }
  0x5c   : > { %v411_v4 = vrot.slane %v410_v0, 4 }
  0x5d   : > { %v417_v6 = vsel %vm385_vm1, %v408_v63, 0.0 }
  0x5e   : > { %576 = vadd.xlane.f32.xlu0 %v574_v58  ;;  %v412_v10 = vadd.f32 %v411_v4, %v410_v0  ;;  %v418_v11 = vrot.slane %v417_v6, 4 }
  0x60   : > { %v413_v15 = vrot.slane %v412_v10, 2  ;;  %v419_v16 = vadd.f32 %v418_v11, %v417_v6 }
  0x62   : > { %518 = vadd.xlane.f32.xlu0 %v516_v2  ;;  %v414_v18 = vadd.f32 %v413_v15, %v412_v10  ;;  %v420_v19 = vrot.slane %v419_v16, 2 }
  0x64   : > { %v415_v22 = vrot.slane %v414_v18, 1  ;;  %v421_v23 = vadd.f32 %v420_v19, %v419_v16 }
  0x66   : > { %v416_v25 = vadd.f32 %v415_v22, %v414_v18  ;;  %v422_v26 = vrot.slane %v421_v23, 1 }
  0x68   : > { %v423_v28 = vadd.f32 %v422_v26, %v421_v23  ;;  %868 = vlog2.f32 %v416_v25 }
  0x6a   : > { %870 = vlog2.f32 %v423_v28 }
  0x75   : > { %v869_v36 = vpop.eup %868 }
  0x76   : > { %v425_v37 = vmul.f32 0.6931472, %v869_v36 }
  0x77   : > { %v871_v39 = vpop.eup %870 }
  0x78   : > { %v427_v40 = vmul.f32 0.6931472, %v871_v39  ;;  %v460_v41 = vsub.f32 %v425_v37, %v451_v35 }
  0x7a   : > { %v461_v42 = vsub.f32 %v427_v40, %v458_v38  ;;  %v462_v43 = vsel %vm380_vm2, %v460_v41, 0.0 }
  0x7c   : > { %v463_v44 = vsel %vm381_vm3, %v461_v42, 0.0 }
  0x7d   : > { %v466_v45 = vcombine.low %v462_v43, %v463_v44 }
  0x7f   : > { %v473_v46 = vrot.slane %v466_v45, %v1142_v20 }
  0x81   : > { %v480_v48 = vrot.slane %v473_v46, %v1142_v20 }
  0x83   : > { %v482_v49 = vadd.f32 %v480_v48, %v459_v47 }
  0x85   : > { %487 = vst.msk [vmem:[#allocation2] sm:$0x3] %vm1119_vm0, %v482_v49 }
  0x8c   : > { %v532_v50 = vld [vmem:[#allocation2] sm:$0x3] }
  0x8d   : > { %v537_v51 = vrot.slane %v532_v50, %v1128_v7  ;;  %v541_v52 = vrot.slane %v532_v50, %v1130_v8 }
  0x8f   : > { %v545_v13 = vsel %vm544_vm4, %v537_v51, 0.0  ;;  %v546_v53 = vsel %vm544_vm4, %v541_v52, 0.0 }
  0x90   : > { %v547_v54 = vadd.f32 %v546_v53, %v545_v13 }
  0x92   : > { %548 = vadd.xlane.f32.xlu1 %v547_v54 }
  0x96   : > { %520 = vadd.xlane.f32.xlu1 %v517_v55 }
  0xe3   : > { %v579_v1 = vpop.xlane.xlu0 %578 }
  0xe4   : > { %v581_v20 = vcvt.f32.s32 %v579_v1 }
  0xe6   : > { %v582_v7 = vshll.u32 %v581_v20, 16 }
  0xe7   : > { %v577_v56 = vpop.xlane.xlu0 %576 }
  0xe8   : > { %v580_v58 = vcvt.f32.s32 %v577_v56 }
  0xea   : > { %v583_v8 = vadd.s32 %v582_v7, %v580_v58 }
  0xeb   : > { %v519_v63 = vpop.xlane.xlu0 %518 }
  0xec   : > { %v584_v57 = vrot.slane %v583_v8, 4  ;;  %v522_v3 = vcvt.f32.s32 %v519_v63 }
  0xee   : > { %v585_v59 = vadd.s32 %v584_v57, %v583_v8 }
  0xf0   : > { %v586_v61 = vrot.slane %v585_v59, 2 }
  0xf2   : > { %v587_v2 = vadd.s32 %v586_v61, %v585_v59 }
  0xf4   : > { %v588_v11 = vrot.slane %v587_v2, 1 }
  0xf6   : > { %v589_v19 = vadd.s32 %v588_v11, %v587_v2 }
 0x11b   : > { %v549_v60 = vpop.xlane.xlu1 %548 }
 0x11c   : > { %v550_v62 = vrot.slane %v549_v60, 4 }
 0x11e   : > { %v551_v0 = vadd.f32 %v550_v62, %v549_v60 }
 0x11f   : > { %v521_v4 = vpop.xlane.xlu1 %520 }
 0x120   : > { %v552_v5 = vrot.slane %v551_v0, 2  ;;  %v523_v6 = vcvt.f32.s32 %v521_v4 }
 0x122   : > { %v553_v9 = vadd.f32 %v552_v5, %v551_v0  ;;  %v524_v10 = vshll.u32 %v523_v6, 16 }
 0x124   : > { %v554_v15 = vrot.slane %v553_v9, 1  ;;  %v525_v16 = vadd.s32 %v524_v10, %v522_v3 }
 0x126   : > { %v555_v17 = vadd.f32 %v554_v15, %v553_v9  ;;  %v526_v18 = vadd.s32 %v525_v16, %v508_v14 }
 0x128   : > { %798 = vpush %v555_v17 }
 0x129   : > { %528 = vst.msk [vmem:[#allocation4] sm:$0xf] %vm356_vm7, %v526_v18 }
 0x12a   : > { %800 = vpush %v589_v19 }
 0x130   : > { %v593_v21 = vld [vmem:[#allocation4] sm:$0xf] }
 0x131   : > { %594 = vst.msk [vmem:[%s345_s29] sm:$0xf] %vm356_vm7, %v593_v21 }
 0x159   : > { %s799_s8 = spop %798 }
 0x15a   : > { %v557_v22 = vstv %s799_s8 }
 0x15b   : > { %s801_s11 = spop %800  ;;  %559 = vst.msk [vmem:[%s332_s6] sm:$0x1] %vm558_vm8, %v557_v22 }
 0x15c   : > { %v591_v23 = vstv %s801_s11 }
 0x15d   : > { %592 = vst.msk [vmem:[%s338_s9] sm:$0x1] %vm558_vm8, %v591_v23 }
 0x15e PF: > { %s21_s20 = sadd.s32 1, %s982_s20   ;;  %s1250_s15 = smov %s966_s16 }
 0x15f   : > { %p18_p9 = scmp.ge.s32.totalorder %s21_s20, 4   ;;  %s1251_s16 = smov %s970_s17 }
 0x160   : > { %s1252_s17 = smov %s1063_s27  ;;  %s1253_s18 = smov %s978_s19 }
 0x161   : > { %s1254_s19 = smov %s1256_s22  ;;  %20 = sbr.rel (!%p18_p9) target bundleno = 6 (0x6), region = 113 }
 0x166   :  { %656 = vsyncpa [#allocation6], 1 }
 0x167   :  { %658 = vsyncpa [#allocation6 + $0x1], 1 }
 0x168   :  { %659 = vsyncpa [#allocation8], 1 }
 0x169   :  { %661 = vsyncpa [#allocation8 + $0x1], 1 }

</bundles_post_ra>
